<compile_context>
chip_gen: v7x
topology: tpu7x:2x2x1
jax: 0.10.0
libtpu: 0.0.40
codegen_flags: <defaults>
</compile_context>

<pallas_src>
import functools

import jax
import jax.numpy as jnp
from jax.experimental import pallas as pl
from jax.experimental.pallas import tpu as pltpu


def _round_up(n, m):
    return ((n + m - 1) // m) * m


def vanet_kernel(x_ref, w1_ref, b1_ref, wh_ref, bh_ref, q_ref, *, action_dim):
    # Shared layer: h = relu(x @ W1 + b1) -> (TB, hidden); fp32 accumulation.
    x = x_ref[...]
    h = jnp.dot(x, w1_ref[...], preferred_element_type=jnp.float32) + b1_ref[...]
    h = jnp.maximum(h, 0.0)

    # Fused heads: one lane-dense (hidden, 128) matmul.
    #   cols [0, action_dim)  -> V
    #   col  action_dim       -> A
    #   cols > action_dim     -> zero padding (sliced off in the wrapper)
    heads = jnp.dot(h.astype(wh_ref.dtype), wh_ref[...],
                    preferred_element_type=jnp.float32) + bh_ref[...]

    # A is a single column, so A.mean(axis=1) == A (faithful to the module,
    # where fc_A outputs 1 feature); the mean over a size-1 axis is free.
    a = heads[:, action_dim:action_dim + 1]
    a_mean = jnp.mean(a, axis=1, keepdims=True)

    # Lane-dense store of the whole padded tile; Q lives in cols [0, action_dim).
    q_ref[...] = (heads + a - a_mean).astype(q_ref.dtype)


def prepare_params(params, action_dim, *, compute_dtype=jnp.float32, lane=128):
    """Fuse fc_V / fc_A into one zero-padded lane-dense head weight + bias."""
    w1, b1 = params["w1"], params["b1"]
    wv, bv = params["wv"], params["bv"]
    wa, ba = params["wa"], params["ba"]
    hidden = w1.shape[1]
    npad = _round_up(action_dim + 1, lane)

    w_head = jnp.zeros((hidden, npad), jnp.float32)
    w_head = w_head.at[:, :action_dim].set(wv)
    w_head = w_head.at[:, action_dim:action_dim + 1].set(wa)
    b_head = jnp.zeros((1, npad), jnp.float32)
    b_head = b_head.at[:, :action_dim].set(bv)
    b_head = b_head.at[:, action_dim:action_dim + 1].set(ba)

    return {
        "w1": w1.astype(compute_dtype),
        "b1": b1.astype(jnp.float32),          # biases / accumulation stay fp32
        "w_head": w_head.astype(compute_dtype),
        "b_head": b_head.astype(jnp.float32),
        "action_dim": action_dim,
        "compute_dtype": compute_dtype,
    }


def vanet_forward(x, prepped, *, block_b=128):
    """x: (B, state_dim). Returns Q of shape (B, action_dim), fp32."""
    w1, b1 = prepped["w1"], prepped["b1"]
    wh, bh = prepped["w_head"], prepped["b_head"]
    action_dim = prepped["action_dim"]
    compute_dtype = prepped["compute_dtype"]

    B, state_dim = x.shape
    hidden = w1.shape[1]
    npad = wh.shape[1]

    # Batch tile: multiple of 8 sublanes; pad B so the grid divides exactly.
    tb = min(block_b, _round_up(B, 8))
    b_pad = _round_up(B, tb)
    x = x.astype(compute_dtype)
    if b_pad != B:
        x = jnp.pad(x, ((0, b_pad - B), (0, 0)))

    grid = (b_pad // tb,)
    kernel = functools.partial(vanet_kernel, action_dim=action_dim)

    q_pad = pl.pallas_call(
        kernel,
        out_shape=jax.ShapeDtypeStruct((b_pad, npad), jnp.float32),
        grid=grid,
        in_specs=[
            pl.BlockSpec((tb, state_dim), lambda i: (i, 0)),      # x tile (pipelined)
            pl.BlockSpec((state_dim, hidden), lambda i: (0, 0)),  # W1 (VMEM-resident)
            pl.BlockSpec((1, hidden), lambda i: (0, 0)),          # b1
            pl.BlockSpec((hidden, npad), lambda i: (0, 0)),       # fused head W
            pl.BlockSpec((1, npad), lambda i: (0, 0)),            # fused head b
        ],
        out_specs=pl.BlockSpec((tb, npad), lambda i: (i, 0)),     # lane-dense Q tile
        compiler_params=pltpu.CompilerParams(
            dimension_semantics=("parallel",),        # v7x: shard batch over 2 TCs
            vmem_limit_bytes=32 * 1024 * 1024,        # safe on v5e/v6e/v7x
        ),
    )(x, w1, b1, wh, bh)

    return q_pad[:B, :action_dim]


def init_params(key, state_dim, hidden_dim, action_dim):
    """Deterministic synthetic params. Torch stores Linear weights (out, in);
    we keep them pre-transposed (in, out); biases are (1, out)."""
    k1, k2, k3, k4, k5, k6 = jax.random.split(key, 6)
    s1 = 1.0 / jnp.sqrt(jnp.float32(state_dim))
    s2 = 1.0 / jnp.sqrt(jnp.float32(hidden_dim))
    u = jax.random.uniform
    return {
        "w1": u(k1, (state_dim, hidden_dim), jnp.float32, -s1, s1),
        "b1": u(k2, (1, hidden_dim), jnp.float32, -s1, s1),
        # fc_V: Linear(hidden_dim, action_dim)
        "wv": u(k3, (hidden_dim, action_dim), jnp.float32, -s2, s2),
        "bv": u(k4, (1, action_dim), jnp.float32, -s2, s2),
        # fc_A: Linear(hidden_dim, 1)
        "wa": u(k5, (hidden_dim, 1), jnp.float32, -s2, s2),
        "ba": u(k6, (1, 1), jnp.float32, -s2, s2),
    }


def vanet_reference(x, p):
    hi = jax.lax.Precision.HIGHEST
    h = jnp.maximum(jnp.dot(x, p["w1"], precision=hi) + p["b1"], 0.0)
    V = jnp.dot(h, p["wv"], precision=hi) + p["bv"]
    A = jnp.dot(h, p["wa"], precision=hi) + p["ba"]
    return V + A - jnp.mean(A, axis=1, keepdims=True)


if __name__ == "__main__":
    # Pendulum-v1: state_dim=3; module spec: hidden_dim=128, action_dim=11.
    # batch=200 exercises the batch grid (2 tiles of 128) and the B-padding path.
    batch, state_dim, hidden_dim, action_dim = 200, 3, 128, 11

    key = jax.random.PRNGKey(0)
    kx, kp = jax.random.split(key)
    x = jax.random.normal(kx, (batch, state_dim), jnp.float32)
    params = init_params(kp, state_dim, hidden_dim, action_dim)

    prepped = prepare_params(params, action_dim, compute_dtype=jnp.float32)
    q = jax.block_until_ready(vanet_forward(x, prepped, block_b=128))

    q_ref = vanet_reference(x, params)
    assert q.shape == (batch, action_dim)
    assert jnp.allclose(q, q_ref, atol=1e-4, rtol=1e-4), float(
        jnp.max(jnp.abs(q - q_ref)))

    print("KERNEL_OK")
</pallas_src>

<mosaic_0001>
module attributes {stable_mosaic.version = 11 : i64} {
  func.func @vanet_kernel(%arg0: i32, %arg1: memref<128x3xf32, #tpu.memory_space<vmem>>, %arg2: memref<3x128xf32, #tpu.memory_space<vmem>>, %arg3: memref<1x128xf32, #tpu.memory_space<vmem>>, %arg4: memref<128x128xf32, #tpu.memory_space<vmem>>, %arg5: memref<1x128xf32, #tpu.memory_space<vmem>>, %arg6: memref<128x128xf32, #tpu.memory_space<vmem>>) attributes {dimension_semantics = [#tpu.dimension_semantics<parallel>], iteration_bounds = array<i64: 2>, scalar_prefetch = 0 : i64, scratch_operands = 0 : i64, tpu.core_type = #tpu.core_type<tc>, window_params = [{transform_indices = @transform_0, window_bounds = array<i64: 128, 3>}, {pipeline_mode = #tpu.pipeline_mode<synchronous>, transform_indices = @transform_1, window_bounds = array<i64: 3, 128>}, {pipeline_mode = #tpu.pipeline_mode<synchronous>, transform_indices = @transform_2, window_bounds = array<i64: 1, 128>}, {pipeline_mode = #tpu.pipeline_mode<synchronous>, transform_indices = @transform_3, window_bounds = array<i64: 128, 128>}, {pipeline_mode = #tpu.pipeline_mode<synchronous>, transform_indices = @transform_4, window_bounds = array<i64: 1, 128>}, {transform_indices = @transform_5, window_bounds = array<i64: 128, 128>}]} {
    %c0 = arith.constant 0 : index
    %c0_0 = arith.constant 0 : index
    %0 = vector.load %arg1[%c0, %c0_0] : memref<128x3xf32, #tpu.memory_space<vmem>>, vector<128x3xf32>
    %c0_1 = arith.constant 0 : index
    %c0_2 = arith.constant 0 : index
    %1 = vector.load %arg2[%c0_1, %c0_2] : memref<3x128xf32, #tpu.memory_space<vmem>>, vector<3x128xf32>
    %cst = arith.constant dense<0.000000e+00> : vector<128x128xf32>
    %2 = tpu.matmul %0, %1, %cst {dimension_numbers = #tpu.dot_dimension_numbers<[1], [0], [0], [1], [0, 0, 1, 1], [], []>} : vector<128x3xf32>, vector<3x128xf32>, vector<128x128xf32> -> vector<128x128xf32>
    %c0_3 = arith.constant 0 : index
    %c0_4 = arith.constant 0 : index
    %3 = vector.load %arg3[%c0_3, %c0_4] : memref<1x128xf32, #tpu.memory_space<vmem>>, vector<1x128xf32>
    %4 = vector.broadcast %3 : vector<1x128xf32> to vector<128x128xf32>
    %5 = arith.addf %2, %4 : vector<128x128xf32>
    %cst_5 = arith.constant 0.000000e+00 : f32
    %6 = vector.broadcast %cst_5 : f32 to vector<128x128xf32>
    %7 = arith.maximumf %5, %6 : vector<128x128xf32>
    %c0_6 = arith.constant 0 : index
    %c0_7 = arith.constant 0 : index
    %8 = vector.load %arg4[%c0_6, %c0_7] : memref<128x128xf32, #tpu.memory_space<vmem>>, vector<128x128xf32>
    %cst_8 = arith.constant dense<0.000000e+00> : vector<128x128xf32>
    %9 = tpu.matmul %7, %8, %cst_8 {dimension_numbers = #tpu.dot_dimension_numbers<[1], [0], [0], [1], [0, 0, 1, 1], [], []>} : vector<128x128xf32>, vector<128x128xf32>, vector<128x128xf32> -> vector<128x128xf32>
    %c0_9 = arith.constant 0 : index
    %c0_10 = arith.constant 0 : index
    %10 = vector.load %arg5[%c0_9, %c0_10] : memref<1x128xf32, #tpu.memory_space<vmem>>, vector<1x128xf32>
    %11 = vector.broadcast %10 : vector<1x128xf32> to vector<128x128xf32>
    %12 = arith.addf %9, %11 : vector<128x128xf32>
    %13 = vector.extract_strided_slice %12 {offsets = [0, 11], sizes = [128, 1], strides = [1, 1]} : vector<128x128xf32> to vector<128x1xf32>
    %cst_11 = arith.constant dense<0.000000e+00> : vector<128xf32>
    %14 = vector.multi_reduction <add>, %13, %cst_11 [1] : vector<128x1xf32> to vector<128xf32>
    %15 = vector.shape_cast %14 : vector<128xf32> to vector<128x1xf32>
    %cst_12 = arith.constant 1.000000e+00 : f32
    %16 = vector.broadcast %cst_12 : f32 to vector<128x1xf32>
    %17 = arith.divf %15, %16 : vector<128x1xf32>
    %18 = vector.broadcast %13 : vector<128x1xf32> to vector<128x128xf32>
    %19 = arith.addf %12, %18 : vector<128x128xf32>
    %20 = vector.broadcast %17 : vector<128x1xf32> to vector<128x128xf32>
    %21 = arith.subf %19, %20 : vector<128x128xf32>
    %c0_13 = arith.constant 0 : index
    %c0_14 = arith.constant 0 : index
    %22 = vector.load %arg6[%c0_13, %c0_14] : memref<128x128xf32, #tpu.memory_space<vmem>>, vector<128x128xf32>
    tpu.vector_store %arg6[%c0_13, %c0_14], %21 {strides = array<i32>} : memref<128x128xf32, #tpu.memory_space<vmem>>, vector<128x128xf32>,
    return
  }
  func.func @transform_0(%arg0: i32) -> (i32, i32) {
    %c0_i32 = arith.constant 0 : i32
    %c0_i32_0 = arith.constant 0 : i32
    return %arg0, %c0_i32 : i32, i32
  }
  func.func @transform_1(%arg0: i32) -> (i32, i32) {
    %c0_i32 = arith.constant 0 : i32
    %c0_i32_0 = arith.constant 0 : i32
    %c0_i32_1 = arith.constant 0 : i32
    return %c0_i32, %c0_i32_0 : i32, i32
  }
  func.func @transform_2(%arg0: i32) -> (i32, i32) {
    %c0_i32 = arith.constant 0 : i32
    %c0_i32_0 = arith.constant 0 : i32
    %c0_i32_1 = arith.constant 0 : i32
    return %c0_i32, %c0_i32_0 : i32, i32
  }
  func.func @transform_3(%arg0: i32) -> (i32, i32) {
    %c0_i32 = arith.constant 0 : i32
    %c0_i32_0 = arith.constant 0 : i32
    %c0_i32_1 = arith.constant 0 : i32
    return %c0_i32, %c0_i32_0 : i32, i32
  }
  func.func @transform_4(%arg0: i32) -> (i32, i32) {
    %c0_i32 = arith.constant 0 : i32
    %c0_i32_0 = arith.constant 0 : i32
    %c0_i32_1 = arith.constant 0 : i32
    return %c0_i32, %c0_i32_0 : i32, i32
  }
  func.func @transform_5(%arg0: i32) -> (i32, i32) {
    %c0_i32 = arith.constant 0 : i32
    %c0_i32_0 = arith.constant 0 : i32
    return %arg0, %c0_i32 : i32, i32
  }
}

</mosaic_0001>

<bundles_post_ra>
// kernel: tpu_custom_call.1
= control target key start
LH: loop header
LB: loop body
LE: loop exit
PB: predicated region body
PF: predicated region fallthrough
CT: control target
= control target key end

     0   :  { %10 = vsyncpa [#allocation3], 0  ;;  %s1581_s0 = inlined_call_operand.vmem [shape: f32[256,3], index: 0, kind: input, shape index: {}]   ;;  %s1582_s1 = inlined_call_operand.vmem [shape: f32[3,128], index: 1, kind: input, shape index: {}]   ;;  %s1583_s2 = inlined_call_operand.vmem [shape: f32[1,128], index: 2, kind: input, shape index: {}]   ;;  %s1584_s3 = inlined_call_operand.vmem [shape: f32[128,128], index: 3, kind: input, shape index: {}]   ;;  %s1585_s4 = inlined_call_operand.vmem [shape: f32[1,128], index: 4, kind: input, shape index: {}]   ;;  %s1586_s5 = inlined_call_operand.hbm [shape: f32[256,128], index: 5, kind: output, shape index: {}]  }
   0x1   :  { %12 = vsyncpa [#allocation3 + $0x1], 0  ;;  %s1285_s18 = smov 0   ;;  %s1287_s19 = smov 0  }
   0x2   :  { %s1289_s20 = smov 0   ;;  %s1291_s21 = smov 0  }
   0x3 LB: > { %s1306_s22 = sadd.s32 4294967295, %s1249_s21   ;;  %s932_s23 = sadd.s32 4294967294, %s1249_s21   ;;  %s1249_s21 = sphi %s1291_s21, %s1592_s21   ;;  %s1245_s20 = sphi %s1289_s20, %s1591_s20   ;;  %s1241_s19 = sphi %s1287_s19, %s1590_s19   ;;  %s1237_s18 = sphi %s1285_s18, %s1589_s18  }
   0x4   : > { %s1310_s24 = sadd.s32 1, %s1249_s21   ;;  %s135_s25 = sadd.s32 1, %s1245_s20 }
   0x5   : > { %s132_s26 = ssub.s32 %s1249_s21, %s1310_s24  ;;  %p145_p0 = scmp.ne.s32.totalorder %s1245_s20, %s1241_s19 }
   0x6   : > { %p133_p1 = scmp.eq.s32.totalorder %s132_s26, 0  ;;  %p146_p2 = scmp.eq.s32.totalorder %s1306_s22, 1 }
   0x7   : > { %p151_p3 = scmp.ne.s32.totalorder %s1241_s19, %s1237_s18  ;;  %p152_p4 = scmp.eq.s32.totalorder %s932_s23, 1 }
   0x8   : > { %s1321_s27 = scalar_select %p133_p1, %s1245_s20, %s135_s25  }
   0x9   : > { %p1323_p5 = por %p146_p2, %p145_p0  ;;  %p1327_p6 = por %p152_p4, %p151_p3 }
   0xa   : > { %p935_p7 = scmp.ge.s32.totalorder %s1249_s21, 1  ;;  %p191_p8 = scmp.lt.s32.totalorder %s1249_s21, 3 }
   0xc   : > { %p192_p9 = pnand %p935_p7, %p191_p8 }
   0xd   : > { %v242_v0 = vld [vmem:[%s1582_s1] sm:$0x7] (!%p192_p9)  ;;  %vm299_vm0 = vcmask (!%p192_p9), 1042432   ;;  %s937_s7 = sshll.u32 (!%p192_p9), %s1306_s22, 4  ;;  %v465_v2 = vld [vmem:[%s1584_s3 + $0x8] sm:$0xff] (!%p192_p9)  ;;  %v466_v3 = vld [vmem:[%s1584_s3 + $0x10] sm:$0xff] (!%p192_p9) }
   0xe   : > { %195 = sbr.rel (%p192_p9) target bundleno = 663 (0x297), region = 40  ;;  %v464_v1 = vld [vmem:[%s1584_s3] sm:$0xff] (!%p192_p9)  ;;  %1013 = vmatprep.subr.msk.mxu0 (!%p192_p9), %vm299_vm0, %v242_v0  ;;  %p220_p10 = scmp.lt.s32.totalorder (!%p192_p9), %s937_s7, 31  ;;  %v467_v4 = vld [vmem:[%s1584_s3 + $0x18] sm:$0xff] (!%p192_p9)  ;;  %vm250_vm1 = vcmask (!%p192_p9), 23552   ;;  %v469_v8 = vld [vmem:[%s1584_s3 + $0x28] sm:$0xff] (!%p192_p9) }
   0xf   : > { %1014 = vmatpush3.msk.msra.mxu0 (!%p192_p9), %vm299_vm0, %v242_v0  ;;  %v1095_v5 = vpack.c.bf16 (!%p192_p9), %v465_v2, %v464_v1  ;;  %v1099_v6 = vpack.c.bf16 (!%p192_p9), %v467_v4, %v466_v3  ;;  %v468_v7 = vld [vmem:[%s1584_s3 + $0x20] sm:$0xff] (!%p192_p9)  ;;  %v470_v14 = vld [vmem:[%s1584_s3 + $0x30] sm:$0xff] (!%p192_p9)  ;;  %v471_v15 = vld [vmem:[%s1584_s3 + $0x38] sm:$0xff] (!%p192_p9)  ;;  %s963_s26 = sshll.u32 (!%p192_p9), %s1306_s22, 11  ;;  %s1252_s10 = smov (!%p192_p9), [#allocation2]  }
  0x10   : > { %v1103_v12 = vpack.c.bf16 (!%p192_p9), %v469_v8, %v468_v7  ;;  %v1107_v17 = vpack.c.bf16 (!%p192_p9), %v471_v15, %v470_v14  ;;  %v472_v19 = vld [vmem:[%s1584_s3 + $0x40] sm:$0xff] (!%p192_p9)  ;;  %v473_v20 = vld [vmem:[%s1584_s3 + $0x48] sm:$0xff] (!%p192_p9)  ;;  %v474_v24 = vld [vmem:[%s1584_s3 + $0x50] sm:$0xff] (!%p192_p9)  ;;  %s1191_s11 = sshll.u32 (!%p192_p9), %s1252_s10, 4  ;;  %s1192_s11 = int_to_ptr.vmem [resolvable:$false] %s1191_s11 }
  0x11   : > { %1096 = vmatprep.subr.bf16.mxu0 (!%p192_p9), %v1095_v5  ;;  %1127 = vmatprep.subr.bf16.mxu1 (!%p192_p9), %v1095_v5  ;;  %v1111_v22 = vpack.c.bf16 (!%p192_p9), %v473_v20, %v472_v19  ;;  %v475_v25 = vld [vmem:[%s1584_s3 + $0x58] sm:$0xff] (!%p192_p9)  ;;  %v476_v29 = vld [vmem:[%s1584_s3 + $0x60] sm:$0xff] (!%p192_p9)  ;;  %v477_v30 = vld [vmem:[%s1584_s3 + $0x68] sm:$0xff] (!%p192_p9)  ;;  %s1193_s12 = scalar_lea.vmem (!%p192_p9), %s1192_s11, 4096 }
  0x12   : > { %1135 = vmatpush3.bf16.msra.mxu1 (!%p192_p9), %v1095_v5  ;;  %v1115_v27 = vpack.c.bf16 (!%p192_p9), %v475_v25, %v474_v24  ;;  %v1119_v32 = vpack.c.bf16 (!%p192_p9), %v477_v30, %v476_v29  ;;  %v478_v38 = vld [vmem:[%s1584_s3 + $0x70] sm:$0xff] (!%p192_p9)  ;;  %v479_v39 = vld [vmem:[%s1584_s3 + $0x78] sm:$0xff] (!%p192_p9)  ;;  %v939_v41 = vld [vmem:[%s1583_s2] ss:$0 sm:$0xff] (!%p192_p9) }
  0x13   : > { %1128 = vmatprep.subr.bf16.mxu1 (!%p192_p9), %v1099_v6  ;;  %v1123_v40 = vpack.c.bf16 (!%p192_p9), %v479_v39, %v478_v38 }
  0x15   : > { %s1594_s7 = smov (!%p220_p10, %s937_s7), 31 }
  0x16   : > { %s938_s16 = sshll.u32 %s1594_s7, 3  ;;  %1136 = vmatpush3.bf16.msra.mxu1 %v1099_v6  ;;  %s1532_s7 = scalar_lea.hbm %s1586_s5, %s963_s26 }
  0x17   : > { %s1352_s25 = scalar_lea.vmem %s1581_s0, %s938_s16  ;;  %1129 = vmatprep.subr.bf16.mxu1 %v1103_v12  ;;  %s216_s16 = sand.u32 1, %s1241_s19  }
  0x18   : > { %v226_v9 = vld [vmem:[%s1352_s25] sm:$0xff]  ;;  %v227_v10 = vld [vmem:[%s1352_s25 + $0x8] sm:$0xff]  ;;  %v228_v11 = vld [vmem:[%s1352_s25 + $0x10] sm:$0xff]  ;;  %s936_s17 = sshll.u32 %s216_s16, 7  ;;  %s1540_s22 = scalar_lea.sflag [#allocation3], %s216_s16 }
  0x19   : > { %1015 = vmatprep.mubr.msk.f32.mxu0 %vm250_vm1, %v226_v9  ;;  %v229_v13 = vld [vmem:[%s1352_s25 + $0x18] sm:$0xff]  ;;  %v230_v16 = vld [vmem:[%s1352_s25 + $0x20] sm:$0xff]  ;;  %v231_v18 = vld [vmem:[%s1352_s25 + $0x28] sm:$0xff]  ;;  %s1496_s23 = scalar_lea.vmem [#allocation2], %s936_s17 }
  0x1a   : > { %1016 = vmatmul.mubr.msk.f32.vlgmr.msra.gmra.mrb[0].mxu0 %vm250_vm1, %v227_v10  ;;  %1137 = vmatpush3.bf16.msra.mxu1 %v1103_v12  ;;  %v232_v21 = vld [vmem:[%s1352_s25 + $0x30] sm:$0xff]  ;;  %v233_v23 = vld [vmem:[%s1352_s25 + $0x38] sm:$0xff]  ;;  %v234_v26 = vld [vmem:[%s1352_s25 + $0x40] sm:$0xff]  ;;  %s870_s30 = sshll.u32 %s1496_s23, 4  ;;  %s1534_s30 = int_to_ptr.vmem [resolvable:$true] %s870_s30 }
  0x1b   : > { %1018 = vmatprep.mubr.msk.f32.mxu0 %vm250_vm1, %v228_v11  ;;  %1098 = vmatpush3.bf16.msra.mxu0 %v1095_v5  ;;  %v235_v28 = vld [vmem:[%s1352_s25 + $0x48] sm:$0xff]  ;;  %v236_v31 = vld [vmem:[%s1352_s25 + $0x50] sm:$0xff]  ;;  %v237_v33 = vld [vmem:[%s1352_s25 + $0x58] sm:$0xff]  ;;  %s1187_s9 = scalar_lea.vmem %s1534_s30, 2048  ;;  %p1194_p0 = scmp.lt.s32.totalorder %s1534_s30, %s1192_s11 }
  0x1c   : > { %1100 = vmatprep.subr.bf16.mxu0 %v1099_v6  ;;  %1130 = vmatprep.subr.bf16.mxu1 %v1107_v17  ;;  %v238_v34 = vld [vmem:[%s1352_s25 + $0x60] sm:$0xff]  ;;  %v239_v35 = vld [vmem:[%s1352_s25 + $0x68] sm:$0xff]  ;;  %v240_v36 = vld [vmem:[%s1352_s25 + $0x70] sm:$0xff]  ;;  %p1188_p11 = scmp.ne.s32.totalorder %s1534_s30, %s1187_s9  ;;  %p1195_p1 = scmp.lt.s32.totalorder %s1193_s12, %s1187_s9 }
  0x1d   : > { %v241_v37 = vld [vmem:[%s1352_s25 + $0x78] sm:$0xff] }
  0x1e   : > { %1019 = vmatmul.mubr.msk.f32.gmra.mrb[2].mxu0 %vm250_vm1, %v229_v13  ;;  %1138 = vmatpush3.bf16.msra.mxu1 %v1107_v17  ;;  %p1189_p12 = pnand %p1188_p11, %p1323_p5  ;;  %p1196_p2 = por %p1195_p1, %p1194_p0 }
  0x1f   : > { %1021 = vmatprep.mubr.msk.f32.mxu0 %vm250_vm1, %v230_v16  ;;  %1102 = vmatpush3.bf16.msra.mxu0 %v1099_v6 }
  0x20   : > { %1104 = vmatprep.subr.bf16.mxu0 %v1103_v12  ;;  %1131 = vmatprep.subr.bf16.mxu1 %v1111_v22  ;;  %p1190_p13 = pneg %p1189_p12 }
  0x22   : > { %1022 = vmatmul.mubr.msk.f32.gmra.mrb[4].mxu0 %vm250_vm1, %v231_v18  ;;  %1139 = vmatpush3.bf16.msra.mxu1 %v1111_v22  ;;  %p1197_p3 = pnand %p1196_p2, %p1190_p13 }
  0x23   : > { %1024 = vmatprep.mubr.msk.f32.mxu0 %vm250_vm1, %v232_v21  ;;  %1106 = vmatpush3.bf16.msra.mxu0 %v1103_v12 }
  0x24   : > { %1108 = vmatprep.subr.bf16.mxu0 %v1107_v17  ;;  %1132 = vmatprep.subr.bf16.mxu1 %v1115_v27 }
  0x26   : > { %1025 = vmatmul.mubr.msk.f32.gmra.mrb[6].mxu0 %vm250_vm1, %v233_v23  ;;  %1140 = vmatpush3.bf16.msra.mxu1 %v1115_v27 }
  0x27   : > { %1027 = vmatprep.mubr.msk.f32.mxu0 %vm250_vm1, %v234_v26  ;;  %1110 = vmatpush3.bf16.msra.mxu0 %v1107_v17  ;;  %v1251_v26 = vmov 11  }
  0x28   : > { %1112 = vmatprep.subr.bf16.mxu0 %v1111_v22  ;;  %1133 = vmatprep.subr.bf16.mxu1 %v1119_v32 }
  0x29   : > { %1186 = vset.pattern.permute.xlu1 %v1251_v26  ;;  %1185 = vset.pattern.permute.xlu0 %v1251_v26 }
  0x2a   : > { %1028 = vmatmul.mubr.msk.f32.gmra.mrb[8].mxu0 %vm250_vm1, %v235_v28  ;;  %1141 = vmatpush3.bf16.msra.mxu1 %v1119_v32 }
  0x2b   : > { %1030 = vmatprep.mubr.msk.f32.mxu0 %vm250_vm1, %v236_v31  ;;  %1114 = vmatpush3.bf16.msra.mxu0 %v1111_v22 }
  0x2c   : > { %1116 = vmatprep.subr.bf16.mxu0 %v1115_v27  ;;  %1134 = vmatprep.subr.bf16.mxu1 %v1123_v40 }
  0x2e   : > { %1031 = vmatmul.mubr.msk.f32.gmra.mrb[10].mxu0 %vm250_vm1, %v237_v33  ;;  %1142 = vmatpush3.bf16.msra.mxu1 %v1123_v40 }
  0x2f   : > { %1033 = vmatprep.mubr.msk.f32.mxu0 %vm250_vm1, %v238_v34  ;;  %1118 = vmatpush3.bf16.msra.mxu0 %v1115_v27  ;;  %v957_v27 = vld [vmem:[%s1585_s4] ss:$0 sm:$0xff] }
  0x30   : > { %1120 = vmatprep.subr.bf16.mxu0 %v1119_v32 }
  0x32   : > { %1034 = vmatmul.mubr.msk.f32.gmra.mrb[12].mxu0 %vm250_vm1, %v239_v35 }
  0x33   : > { %1036 = vmatprep.mubr.msk.f32.mxu0 %vm250_vm1, %v240_v36  ;;  %1122 = vmatpush3.bf16.msra.mxu0 %v1119_v32 }
  0x34   : > { %1124 = vmatprep.subr.bf16.mxu0 %v1123_v40 }
  0x36   : > { %1037 = vmatmul.mubr.msk.f32.gmra.mrb[14].mxu0 %vm250_vm1, %v241_v37 }
  0x37   : > { %1126 = vmatpush3.bf16.msra.mxu0 %v1123_v40 }
  0xed   : > { %v1017_v42 = vpop.f32.mrb[0].mxu0 }
  0xee   : > { %v375_v43 = vadd.f32 %v1017_v42, %v939_v41  ;;  %v369_v44 = vpop.f32.mrb[1].mxu0 }
  0xef   : > { %v370_v45 = vadd.f32 %v939_v41, %v369_v44 }
  0xf0   : > { %v449_v48 = vmax.f32 %v375_v43, 0.0 }
  0xf1   : > { %v448_v46 = vmax.f32 %v370_v45, 0.0  ;;  %v1020_v47 = vpop.f32.mrb[2].mxu0 }
  0xf2   : > { %v385_v49 = vadd.f32 %v1020_v47, %v939_v41  ;;  %v379_v50 = vpop.f32.mrb[3].mxu0 }
  0xf3   : > { %v380_v51 = vadd.f32 %v939_v41, %v379_v50  ;;  %1071 = vmatprep.mubr.f32.mxu0 %v448_v46 }
  0xf4   : > { %1072 = vmatmul.mubr.f32.vlgmr.msra.gmra.mrb[16].mxu0 %v449_v48  ;;  %v451_v54 = vmax.f32 %v385_v49, 0.0 }
  0xf5   : > { %v450_v52 = vmax.f32 %v380_v51, 0.0  ;;  %v1023_v53 = vpop.f32.mrb[4].mxu0 }
  0xf6   : > { %v395_v55 = vadd.f32 %v1023_v53, %v939_v41  ;;  %v389_v56 = vpop.f32.mrb[5].mxu0 }
  0xf7   : > { %1074 = vmatprep.mubr.f32.mxu0 %v450_v52  ;;  %v390_v57 = vadd.f32 %v939_v41, %v389_v56 }
  0xf8   : > { %1075 = vmatmul.mubr.f32.gmra.mrb[18].mxu0 %v451_v54  ;;  %v453_v58 = vmax.f32 %v395_v55, 0.0 }
  0xf9   : > { %v452_v59 = vmax.f32 %v390_v57, 0.0  ;;  %v1026_v60 = vpop.f32.mrb[6].mxu0 }
  0xfa   : > { %v405_v61 = vadd.f32 %v1026_v60, %v939_v41  ;;  %v399_v62 = vpop.f32.mrb[7].mxu0 }
  0xfb   : > { %1077 = vmatprep.mubr.f32.mxu0 %v452_v59  ;;  %v400_v63 = vadd.f32 %v939_v41, %v399_v62 }
  0xfc   : > { %1078 = vmatmul.mubr.f32.gmra.mrb[20].mxu0 %v453_v58  ;;  %v455_v0 = vmax.f32 %v405_v61, 0.0 }
  0xfd   : > { %v454_v1 = vmax.f32 %v400_v63, 0.0  ;;  %v1029_v2 = vpop.f32.mrb[8].mxu0 }
  0xfe   : > { %v415_v3 = vadd.f32 %v1029_v2, %v939_v41  ;;  %v409_v4 = vpop.f32.mrb[9].mxu0 }
  0xff   : > { %1080 = vmatprep.mubr.f32.mxu1 %v454_v1  ;;  %v410_v5 = vadd.f32 %v939_v41, %v409_v4 }
 0x100   : > { %1081 = vmatmul.mubr.f32.vlgmr.msra.gmra.mrb[0].mxu1 %v455_v0  ;;  %v457_v6 = vmax.f32 %v415_v3, 0.0 }
 0x101   : > { %v456_v7 = vmax.f32 %v410_v5, 0.0  ;;  %v1032_v8 = vpop.f32.mrb[10].mxu0 }
 0x102   : > { %v425_v9 = vadd.f32 %v1032_v8, %v939_v41  ;;  %v419_v10 = vpop.f32.mrb[11].mxu0 }
 0x103   : > { %1083 = vmatprep.mubr.f32.mxu1 %v456_v7  ;;  %v420_v11 = vadd.f32 %v939_v41, %v419_v10 }
 0x104   : > { %1084 = vmatmul.mubr.f32.gmra.mrb[2].mxu1 %v457_v6  ;;  %v459_v12 = vmax.f32 %v425_v9, 0.0 }
 0x105   : > { %v458_v13 = vmax.f32 %v420_v11, 0.0  ;;  %v1035_v14 = vpop.f32.mrb[12].mxu0 }
 0x106   : > { %v435_v15 = vadd.f32 %v1035_v14, %v939_v41  ;;  %v429_v16 = vpop.f32.mrb[13].mxu0 }
 0x107   : > { %1086 = vmatprep.mubr.f32.mxu1 %v458_v13  ;;  %v430_v17 = vadd.f32 %v939_v41, %v429_v16 }
 0x108   : > { %1087 = vmatmul.mubr.f32.gmra.mrb[4].mxu1 %v459_v12  ;;  %v461_v18 = vmax.f32 %v435_v15, 0.0 }
 0x109   : > { %v460_v19 = vmax.f32 %v430_v17, 0.0  ;;  %v1038_v20 = vpop.f32.mrb[14].mxu0 }
 0x10a   : > { %v445_v21 = vadd.f32 %v1038_v20, %v939_v41  ;;  %v439_v22 = vpop.f32.mrb[15].mxu0 }
 0x10b   : > { %1089 = vmatprep.mubr.f32.mxu1 %v460_v19  ;;  %v440_v23 = vadd.f32 %v939_v41, %v439_v22 }
 0x10c   : > { %1090 = vmatmul.mubr.f32.gmra.mrb[6].mxu1 %v461_v18  ;;  %v463_v24 = vmax.f32 %v445_v21, 0.0 }
 0x10d   : > { %v462_v25 = vmax.f32 %v440_v23, 0.0 }
 0x10f   : > { %1092 = vmatprep.mubr.f32.mxu1 %v462_v25 }
 0x110   : > { %1093 = vmatmul.mubr.f32.gmra.mrb[8].mxu1 %v463_v24 }
 0x1c7   : > { %v1073_v28 = vpop.f32.mrb[16].mxu0 }
 0x1c8   : > { %v1428_v29 = vadd.f32 %v1073_v28, %v957_v27  ;;  %v553_v30 = vpop.f32.mrb[17].mxu0 }
 0x1c9   : > { %v1432_v32 = vadd.f32 %v957_v27, %v553_v30 }
 0x1ca   : > { %751 = vperm.xlu1 %1186, %v1428_v29   ;;  %655 = vperm.xlu0 %1185, %v1428_v29  }
 0x1cb   : > { %v1076_v31 = vpop.f32.mrb[18].mxu0 }
 0x1cc   : > { %v1434_v33 = vadd.f32 %v1076_v31, %v957_v27  ;;  %v563_v34 = vpop.f32.mrb[19].mxu0 }
 0x1cd   : > { %v1440_v38 = vadd.f32 %v957_v27, %v563_v34 }
 0x1ce   : > { %665 = vperm.xlu1 %1186, %v1434_v33   ;;  %650 = vperm.xlu0 %1185, %v1432_v32  }
 0x1cf   : > { %v1079_v35 = vpop.f32.mrb[20].mxu0 }
 0x1d0   : > { %v573_v36 = vpop.f32.mrb[21].mxu0  ;;  %v1444_v41 = vadd.f32 %v1079_v35, %v957_v27 }
 0x1d1   : > { %v1446_v42 = vadd.f32 %v957_v27, %v573_v36 }
 0x1d2   : > { %761 = vperm.xlu1 %1186, %v1434_v33   ;;  %746 = vperm.xlu0 %1185, %v1432_v32  }
 0x1d3   : > { %v1082_v37 = vpop.f32.mrb[0].mxu1 }
 0x1d4   : > { %v583_v39 = vpop.f32.mrb[1].mxu1  ;;  %v1452_v47 = vadd.f32 %v1082_v37, %v957_v27 }
 0x1d5   : > { %v1454_v48 = vadd.f32 %v957_v27, %v583_v39 }
 0x1d6   : > { %660 = vperm.xlu1 %1186, %v1440_v38   ;;  %756 = vperm.xlu0 %1185, %v1440_v38  }
 0x1d7   : > { %v1085_v40 = vpop.f32.mrb[2].mxu1 }
 0x1d8   : > { %v593_v43 = vpop.f32.mrb[3].mxu1  ;;  %v1460_v52 = vadd.f32 %v1085_v40, %v957_v27 }
 0x1d9   : > { %v1462_v53 = vadd.f32 %v957_v27, %v593_v43 }
 0x1da   : > { %675 = vperm.xlu1 %1186, %v1444_v41   ;;  %670 = vperm.xlu0 %1185, %v1446_v42  }
 0x1db   : > { %v1088_v44 = vpop.f32.mrb[4].mxu1 }
 0x1dc   : > { %v603_v45 = vpop.f32.mrb[5].mxu1  ;;  %v1468_v54 = vadd.f32 %v1088_v44, %v957_v27 }
 0x1dd   : > { %v1470_v55 = vadd.f32 %v957_v27, %v603_v45 }
 0x1de   : > { %771 = vperm.xlu1 %1186, %v1444_v41   ;;  %766 = vperm.xlu0 %1185, %v1446_v42  }
 0x1df   : > { %v1091_v46 = vpop.f32.mrb[6].mxu1 }
 0x1e0   : > { %v613_v49 = vpop.f32.mrb[7].mxu1  ;;  %v1476_v56 = vadd.f32 %v1091_v46, %v957_v27 }
 0x1e1   : > { %v1478_v57 = vadd.f32 %v957_v27, %v613_v49 }
 0x1e2   : > { %685 = vperm.xlu1 %1186, %v1452_v47   ;;  %680 = vperm.xlu0 %1185, %v1454_v48  }
 0x1e3   : > { %v1094_v50 = vpop.f32.mrb[8].mxu1 }
 0x1e4   : > { %v623_v51 = vpop.f32.mrb[9].mxu1  ;;  %v1484_v58 = vadd.f32 %v1094_v50, %v957_v27 }
 0x1e5   : > { %v1486_v59 = vadd.f32 %v957_v27, %v623_v51 }
 0x1e6   : > { %781 = vperm.xlu1 %1186, %v1452_v47   ;;  %776 = vperm.xlu0 %1185, %v1454_v48  }
 0x1ea   : > { %695 = vperm.xlu1 %1186, %v1460_v52   ;;  %690 = vperm.xlu0 %1185, %v1462_v53  }
 0x1ee   : > { %791 = vperm.xlu1 %1186, %v1460_v52   ;;  %786 = vperm.xlu0 %1185, %v1462_v53  }
 0x1f2   : > { %705 = vperm.xlu1 %1186, %v1468_v54   ;;  %700 = vperm.xlu0 %1185, %v1470_v55  }
 0x1f6   : > { %801 = vperm.xlu1 %1186, %v1468_v54   ;;  %796 = vperm.xlu0 %1185, %v1470_v55  }
 0x1fa   : > { %715 = vperm.xlu1 %1186, %v1476_v56   ;;  %710 = vperm.xlu0 %1185, %v1478_v57  }
 0x1fe   : > { %811 = vperm.xlu1 %1186, %v1476_v56   ;;  %806 = vperm.xlu0 %1185, %v1478_v57  }
 0x202   : > { %725 = vperm.xlu1 %1186, %v1484_v58   ;;  %720 = vperm.xlu0 %1185, %v1486_v59  }
 0x206   : > { %821 = vperm.xlu1 %1186, %v1484_v58   ;;  %816 = vperm.xlu0 %1185, %v1486_v59  }
 0x249   : > { %v752_v60 = vpop.permute.xlu1 %751  ;;  %v656_v61 = vpop.permute.xlu0 %655 }
 0x24a   : > { %v729_v62 = vadd.f32 %v656_v61, %v1428_v29 }
 0x24c   : > { %v825_v63 = vsub.f32 %v729_v62, %v752_v60 }
 0x24d   : > { %v666_v0 = vpop.permute.xlu1 %665  ;;  %v651_v1 = vpop.permute.xlu0 %650 }
 0x24e   : > { %841 = vst [vmem:[%s1496_s23 + $0x8] sm:$0xff] %v825_v63  ;;  %v731_v2 = vadd.f32 %v666_v0, %v1434_v33  ;;  %v728_v3 = vadd.f32 %v651_v1, %v1432_v32 }
 0x251   : > { %v762_v4 = vpop.permute.xlu1 %761  ;;  %v747_v5 = vpop.permute.xlu0 %746 }
 0x252   : > { %v827_v6 = vsub.f32 %v731_v2, %v762_v4  ;;  %v824_v7 = vsub.f32 %v728_v3, %v747_v5 }
 0x254   : > { %843 = vst [vmem:[%s1496_s23 + $0x18] sm:$0xff] %v827_v6  ;;  %840 = vst [vmem:[%s1496_s23] sm:$0xff] %v824_v7 }
 0x255   : > { %v661_v8 = vpop.permute.xlu1 %660  ;;  %v757_v9 = vpop.permute.xlu0 %756 }
 0x256   : > { %v730_v10 = vadd.f32 %v661_v8, %v1440_v38 }
 0x258   : > { %v826_v11 = vsub.f32 %v730_v10, %v757_v9 }
 0x259   : > { %v676_v12 = vpop.permute.xlu1 %675  ;;  %v671_v13 = vpop.permute.xlu0 %670 }
 0x25a   : > { %842 = vst [vmem:[%s1496_s23 + $0x10] sm:$0xff] %v826_v11  ;;  %v733_v14 = vadd.f32 %v676_v12, %v1444_v41  ;;  %v732_v15 = vadd.f32 %v671_v13, %v1446_v42 }
 0x25d   : > { %v772_v16 = vpop.permute.xlu1 %771  ;;  %v767_v17 = vpop.permute.xlu0 %766 }
 0x25e   : > { %v829_v18 = vsub.f32 %v733_v14, %v772_v16  ;;  %v828_v19 = vsub.f32 %v732_v15, %v767_v17 }
 0x260   : > { %845 = vst [vmem:[%s1496_s23 + $0x28] sm:$0xff] %v829_v18  ;;  %844 = vst [vmem:[%s1496_s23 + $0x20] sm:$0xff] %v828_v19 }
 0x261   : > { %v686_v20 = vpop.permute.xlu1 %685  ;;  %v681_v21 = vpop.permute.xlu0 %680 }
 0x262   : > { %v735_v22 = vadd.f32 %v686_v20, %v1452_v47  ;;  %v734_v23 = vadd.f32 %v681_v21, %v1454_v48 }
 0x265   : > { %v782_v24 = vpop.permute.xlu1 %781  ;;  %v777_v25 = vpop.permute.xlu0 %776 }
 0x266   : > { %v831_v26 = vsub.f32 %v735_v22, %v782_v24  ;;  %v830_v27 = vsub.f32 %v734_v23, %v777_v25 }
 0x268   : > { %847 = vst [vmem:[%s1496_s23 + $0x38] sm:$0xff] %v831_v26  ;;  %846 = vst [vmem:[%s1496_s23 + $0x30] sm:$0xff] %v830_v27 }
 0x269   : > { %v696_v28 = vpop.permute.xlu1 %695  ;;  %v691_v29 = vpop.permute.xlu0 %690 }
 0x26a   : > { %v737_v30 = vadd.f32 %v696_v28, %v1460_v52  ;;  %v736_v31 = vadd.f32 %v691_v29, %v1462_v53 }
 0x26d   : > { %v792_v32 = vpop.permute.xlu1 %791  ;;  %v787_v33 = vpop.permute.xlu0 %786 }
 0x26e   : > { %v833_v34 = vsub.f32 %v737_v30, %v792_v32  ;;  %v832_v35 = vsub.f32 %v736_v31, %v787_v33 }
 0x270   : > { %849 = vst [vmem:[%s1496_s23 + $0x48] sm:$0xff] %v833_v34  ;;  %848 = vst [vmem:[%s1496_s23 + $0x40] sm:$0xff] %v832_v35 }
 0x271   : > { %v706_v36 = vpop.permute.xlu1 %705  ;;  %v701_v37 = vpop.permute.xlu0 %700 }
 0x272   : > { %v739_v38 = vadd.f32 %v706_v36, %v1468_v54  ;;  %v738_v39 = vadd.f32 %v701_v37, %v1470_v55 }
 0x275   : > { %v802_v40 = vpop.permute.xlu1 %801  ;;  %v797_v41 = vpop.permute.xlu0 %796 }
 0x276   : > { %v835_v42 = vsub.f32 %v739_v38, %v802_v40  ;;  %v834_v43 = vsub.f32 %v738_v39, %v797_v41 }
 0x278   : > { %851 = vst [vmem:[%s1496_s23 + $0x58] sm:$0xff] %v835_v42  ;;  %850 = vst [vmem:[%s1496_s23 + $0x50] sm:$0xff] %v834_v43 }
 0x279   : > { %v716_v44 = vpop.permute.xlu1 %715  ;;  %v711_v45 = vpop.permute.xlu0 %710 }
 0x27a   : > { %v741_v46 = vadd.f32 %v716_v44, %v1476_v56  ;;  %v740_v47 = vadd.f32 %v711_v45, %v1478_v57 }
 0x27d   : > { %v812_v48 = vpop.permute.xlu1 %811  ;;  %v807_v49 = vpop.permute.xlu0 %806 }
 0x27e   : > { %v837_v50 = vsub.f32 %v741_v46, %v812_v48  ;;  %v836_v51 = vsub.f32 %v740_v47, %v807_v49 }
 0x280   : > { %853 = vst [vmem:[%s1496_s23 + $0x68] sm:$0xff] %v837_v50  ;;  %852 = vst [vmem:[%s1496_s23 + $0x60] sm:$0xff] %v836_v51 }
 0x281   : > { %v726_v52 = vpop.permute.xlu1 %725  ;;  %v721_v53 = vpop.permute.xlu0 %720 }
 0x282   : > { %v743_v54 = vadd.f32 %v726_v52, %v1484_v58  ;;  %v742_v55 = vadd.f32 %v721_v53, %v1486_v59 }
 0x285   : > { %v822_v56 = vpop.permute.xlu1 %821  ;;  %v817_v57 = vpop.permute.xlu0 %816 }
 0x286   : > { %v839_v60 = vsub.f32 %v743_v54, %v822_v56  ;;  %v838_v61 = vsub.f32 %v742_v55, %v817_v57 }
 0x288   : > { %855 = vst [vmem:[%s1496_s23 + $0x78] sm:$0xff] %v839_v60  ;;  %854 = vst [vmem:[%s1496_s23 + $0x70] sm:$0xff] %v838_v61 }
 0x289   : > { %1200 = shalt.err (!%p1197_p3)
}
 0x28a   : > { %s1201_s13 = scalar_lea.hbm %s1532_s7, 2048  ;;  %s1205_s15 = scalar_lea.hbm %s1586_s5, 4096 }
 0x28b   : > { %p1202_p4 = scmp.ne.s32.totalorder %s1532_s7, %s1201_s13  ;;  %p1206_p9 = scmp.lt.u32.totalorder %s1532_s7, %s1586_s5 }
 0x28c   : > { %p1207_p10 = scmp.lt.u32.totalorder %s1205_s15, %s1201_s13  ;;  %p1209_p12 = scmp.lt.u32.totalorder %s1201_s13, %s1532_s7 }
 0x28d   : > { %p1203_p7 = pnand %p1202_p4, %p1323_p5 }
 0x28e   : > { %p1208_p11 = por %p1207_p10, %p1206_p9 }
 0x28f   : > { %p1204_p8 = pneg %p1203_p7 }
 0x290   : > { %p1210_p13 = por %p1209_p12, %p1208_p11 }
 0x292   : > { %p1211_p0 = pnand %p1210_p13, %p1204_p8 }
 0x294   : > { %1214 = shalt.err (!%p1211_p0)
}
 0x295   : > { %s1253_s23 = smov 128   ;;  %s1254_s26 = smov 8  }
 0x296   : > { %1143 = dma.vmem_to_hbm [thread:$0]  (%p1323_p5), %s1534_s30, 2048, %s1532_s7, %s1540_s22, %s1253_s23, %s1253_s23, %s1254_s26  }
 0x297 PF: > { %p1149_p1 = scmp.ge.s32.totalorder %s1249_s21, 2  ;;  %s885_s6 = sand.u32 1, %s1237_s18  }
 0x298   : > { %s886_s8 = scalar_lea.sflag [#allocation3], %s885_s6 }
 0x299   : > { %p1146_p2 = pnand %p1149_p1, %p1327_p6 }
 0x29b   : > { %1232 = dma.done.wait (!%p1146_p2), %s886_s8, 2048  }
 0x29c   : > { %1234 = vsyncadd (!%p1146_p2), %s886_s8, 4294965248  ;;  %p15_p3 = scmp.ge.s32.totalorder %s1310_s24, 4   ;;  %s1589_s18 = smov %s1241_s19 }
 0x29d   : > { %s1590_s19 = smov %s1245_s20  ;;  %s1591_s20 = smov %s1321_s27 }
 0x29e   : > { %s1592_s21 = smov %s1310_s24  ;;  %17 = sbr.rel (!%p15_p3) target bundleno = 3 (0x3), region = 75 }
 0x2a5   :  { %891 = vsyncpa [#allocation3], 1 }
 0x2a6   :  { %893 = vsyncpa [#allocation3 + $0x1], 1 }

</bundles_post_ra>
